<compile_context>
chip_gen: v5e
topology: v5e:2x2
jax: 0.10.0
libtpu: 0.0.40
codegen_flags: <defaults>
</compile_context>

<pallas_src>
import jax
import jax.numpy as jnp
from jax import lax
from jax.experimental import pallas as pl
from jax.experimental.pallas import tpu as pltpu

NUM_INPUTS = 784   # 1 * 28 * 28
NUM_OUTPUTS = 10


def linear_kernel(x_ref, w_ref, b_ref, o_ref):
    # x_ref: (B, K) f32, w_ref: (N, K) f32 (PyTorch layout), b_ref: (1, N),
    # o_ref: (B, N).  Contract on K (axis 1 of both) => trans_b matmul on MXU.
    acc = lax.dot_general(
        x_ref[...], w_ref[...],
        dimension_numbers=(((1,), (1,)), ((), ())),
        preferred_element_type=jnp.float32,
        precision=lax.Precision.HIGHEST,   # explicit: no silent bf16 demotion
    )
    o_ref[...] = (acc + b_ref[...]).astype(o_ref.dtype)


def linear_net_forward(x, weight, bias):
    """x: (B, C, H, W) float32; weight: (N, K) (PyTorch layout); bias: (N,).

    Returns (B, N), matching nn.Linear(x.view(B, -1)).
    """
    B = x.shape[0]
    x2d = x.reshape(B, -1)                      # (B, K) -- glue reshape only
    N, K = weight.shape
    assert x2d.shape[1] == K
    b2d = bias.reshape(1, N)                    # (1, N)

    itemsize = jnp.dtype(x2d.dtype).itemsize
    cost = pl.CostEstimate(
        flops=2 * B * K * N,
        transcendentals=0,
        bytes_accessed=itemsize * (B * K + N * K + N + B * N),
    )

    return pl.pallas_call(
        linear_kernel,
        out_shape=jax.ShapeDtypeStruct((B, N), x2d.dtype),
        # No grid: whole arrays live in VMEM for the single invocation.
        in_specs=[
            pl.BlockSpec(memory_space=pltpu.MemorySpace.VMEM),  # x   (B, K)
            pl.BlockSpec(memory_space=pltpu.MemorySpace.VMEM),  # w   (N, K)
            pl.BlockSpec(memory_space=pltpu.MemorySpace.VMEM),  # b   (1, N)
        ],
        out_specs=pl.BlockSpec(memory_space=pltpu.MemorySpace.VMEM),
        cost_estimate=cost,
    )(x2d, weight, b2d)


def init_linear_params(key, num_inputs, num_outputs):
    """Deterministic init mimicking nn.Linear defaults (uniform +/- 1/sqrt(fan_in))."""
    kw, kb = jax.random.split(key)
    bound = 1.0 / jnp.sqrt(jnp.float32(num_inputs))
    weight = jax.random.uniform(
        kw, (num_outputs, num_inputs), jnp.float32, -bound, bound)
    bias = jax.random.uniform(
        kb, (num_outputs,), jnp.float32, -bound, bound)
    return weight, bias


if __name__ == "__main__":
    key = jax.random.PRNGKey(0)
    k_x, k_p = jax.random.split(key)

    # Small MNIST-like input consistent with num_inputs=784: (B=2, C=1, 28, 28)
    x = jax.random.normal(k_x, (2, 1, 28, 28), dtype=jnp.float32)
    weight, bias = init_linear_params(k_p, NUM_INPUTS, NUM_OUTPUTS)

    fwd = jax.jit(linear_net_forward)
    y = fwd(x, weight, bias)
    y = jax.block_until_ready(y)

    # Sanity check against plain-JAX reference (same semantics as nn.Linear),
    # computed at highest precision to match the kernel's explicit setting.
    y_ref = (
        jnp.dot(x.reshape(x.shape[0], -1), weight.T,
                precision=lax.Precision.HIGHEST)
        + bias
    )
    assert y.shape == (2, NUM_OUTPUTS)
    assert jnp.allclose(y, y_ref, atol=1e-4, rtol=1e-4)

    print("KERNEL_OK")
</pallas_src>

<mosaic_0001>
module attributes {stable_mosaic.version = 11 : i64} {
  func.func @linear_kernel(%arg0: memref<2x784xf32, #tpu.memory_space<vmem>>, %arg1: memref<10x784xf32, #tpu.memory_space<vmem>>, %arg2: memref<1x10xf32, #tpu.memory_space<vmem>>, %arg3: memref<2x10xf32, #tpu.memory_space<vmem>>) attributes {dimension_semantics = [], scalar_prefetch = 0 : i64, scratch_operands = 0 : i64, tpu.core_type = #tpu.core_type<tc>} {
    %c0 = arith.constant 0 : index
    %c0_0 = arith.constant 0 : index
    %0 = vector.load %arg0[%c0, %c0_0] : memref<2x784xf32, #tpu.memory_space<vmem>>, vector<2x784xf32>
    %c0_1 = arith.constant 0 : index
    %c0_2 = arith.constant 0 : index
    %1 = vector.load %arg1[%c0_1, %c0_2] : memref<10x784xf32, #tpu.memory_space<vmem>>, vector<10x784xf32>
    %cst = arith.constant dense<0.000000e+00> : vector<2x10xf32>
    %2 = tpu.matmul %0, %1, %cst {dimension_numbers = #tpu.dot_dimension_numbers<[1], [1], [0], [0], [0, 0, 1, 0], [], []>, precision = #tpu.contract_precision<fp32>} : vector<2x784xf32>, vector<10x784xf32>, vector<2x10xf32> -> vector<2x10xf32>
    %c0_3 = arith.constant 0 : index
    %c0_4 = arith.constant 0 : index
    %3 = vector.load %arg2[%c0_3, %c0_4] : memref<1x10xf32, #tpu.memory_space<vmem>>, vector<1x10xf32>
    %4 = vector.broadcast %3 : vector<1x10xf32> to vector<2x10xf32>
    %5 = arith.addf %2, %4 : vector<2x10xf32>
    %c0_5 = arith.constant 0 : index
    %c0_6 = arith.constant 0 : index
    %6 = vector.load %arg3[%c0_5, %c0_6] : memref<2x10xf32, #tpu.memory_space<vmem>>, vector<2x10xf32>
    tpu.vector_store %arg3[%c0_5, %c0_6], %5 {strides = array<i32>} : memref<2x10xf32, #tpu.memory_space<vmem>>, vector<2x10xf32>,
    return
  }
}

</mosaic_0001>

<bundles_post_ra>
// kernel: linear_net_forward.1
= control target key start
LH: loop header
LB: loop body
LE: loop exit
PB: predicated region body
PF: predicated region fallthrough
CT: control target
= control target key end

     0   :  { %s1475_s0 = inlined_call_operand.vmem [shape: f32[2,784], index: 0, kind: input, shape index: {}]   ;;  %s1476_s1 = inlined_call_operand.vmem [shape: f32[10,784], index: 1, kind: input, shape index: {}]   ;;  %s1477_s2 = inlined_call_operand.vmem [shape: f32[1,10], index: 2, kind: input, shape index: {}]   ;;  %s1478_s3 = inlined_call_operand.hbm [shape: f32[2,10], index: 3, kind: output, shape index: {}]  }
   0x1   :  { %v24_v0 = vld [vmem:[%s1476_s1 + $0x38] sm:$0x3]  ;;  %v17_v1 = vld [vmem:[%s1476_s1] sm:$0xff]  ;;  %v18_v7 = vld [vmem:[%s1476_s1 + $0x8] sm:$0xff] }
   0x2   :  { %v15_v2 = vld [vmem:[%s1475_s0] sm:$0xff]  ;;  %v76_v3 = vand.u32 4294901760, %v24_v0  ;;  %v1251_v4 = vand.u32 4294901760, %v17_v1  ;;  %v1262_v10 = vand.u32 4294901760, %v18_v7  ;;  %v26_v12 = vld [vmem:[%s1476_s1 + $0x48] sm:$0x3] }
   0x3   :  { %37 = vst [vmem:[#allocation1] ss:$4 sm:$0xff] %v15_v2  ;;  %v25_v5 = vld [vmem:[%s1476_s1 + $0x40] sm:$0x3] }
   0x4   :  { %v1256_v6 = vand.u32 4294901760, %v25_v5  ;;  %v104_v8 = vsub.f32 %v24_v0, %v76_v3  ;;  %77 = vmatpush.xpose.msra.mxu0 %v76_v3  ;;  %161 = vmatpush.xpose.msra.mxu3 %v76_v3  ;;  %v110_v9 = vsub.f32 %v17_v1, %v1251_v4 }
   0x6   :  { %v263_v11 = vsub.f32 %v25_v5, %v1256_v6 }
   0x7   :  { %8 = vsyncpa [#allocation3], 0  ;;  %136 = vmatpush.xpose.msra.mxu2 %v104_v8  ;;  %v105_v13 = vand.u32 4294901760, %v104_v8  ;;  %v111_v14 = vand.u32 4294901760, %v110_v9  ;;  %v1269_v15 = vsub.f32 %v18_v7, %v1262_v10  ;;  %v1274_v20 = vand.u32 4294901760, %v26_v12  ;;  %v19_v21 = vld [vmem:[%s1476_s1 + $0x10] sm:$0xff] }
   0x8   :  { %v264_v16 = vand.u32 4294901760, %v263_v11  ;;  %79 = vmatpush.xpose.msra.mxu0 %v1251_v4  ;;  %163 = vmatpush.xpose.msra.mxu3 %v1251_v4  ;;  %v27_v28 = vld [vmem:[%s1476_s1 + $0x50] sm:$0x3]  ;;  %v1289_v34 = vand.u32 4294901760, %v19_v21  ;;  %v20_v39 = vld [vmem:[%s1476_s1 + $0x18] sm:$0xff]  ;;  %v21_v7 = vld [vmem:[%s1476_s1 + $0x20] sm:$0xff] }
   0x9   :  { %v106_v17 = vsub.f32 %v104_v8, %v105_v13  ;;  %v112_v18 = vsub.f32 %v110_v9, %v111_v14  ;;  %v270_v19 = vand.u32 4294901760, %v1269_v15  ;;  %v1287_v33 = vsub.f32 %v26_v12, %v1274_v20  ;;  %v16_v47 = vld [vmem:[%s1475_s0 + $0x8] sm:$0x3f]  ;;  %v28_v2 = vld [vmem:[%s1476_s1 + $0x58] sm:$0x3]  ;;  %s1184_s20 = sshll.u32 %s1478_s3, 4  ;;  %s1185_s20 = int_to_ptr.hbm [resolvable:$true] %s1184_s20 }
   0xa   :  { %v40_v22 = vld.sshfl [vmem:[#allocation1] sm:$0xff pattern:$0x73625140]  ;;  %v265_v23 = vsub.f32 %v263_v11, %v264_v16  ;;  %v41_v24 = vld.sshfl [vmem:[#allocation1 + $0x8] sm:$0xff pattern:$0x73625140]  ;;  %v1303_v43 = vsub.f32 %v19_v21, %v1289_v34 }
   0xb   :  { %v107_v25 = vand.u32 4294901760, %v106_v17  ;;  %139 = vmatpush.xpose.msra.mxu2 %v110_v9  ;;  %v80_v26 = vand.u32 4294901760, %v40_v22  ;;  %v271_v27 = vsub.f32 %v1269_v15, %v270_v19  ;;  %v1284_v30 = vand.u32 4294901760, %v41_v24  ;;  %39 = vst [vmem:[#allocation1 + $0x20] ss:$4 sm:$0xff] %v16_v47 }
   0xc   :  { %188 = vmatpush.xpose.msrb.mxu0 %v105_v13  ;;  %v266_v29 = vand.u32 4294901760, %v265_v23  ;;  %v113_v32 = vand.u32 4294901760, %v112_v18  ;;  %v1294_v37 = vand.u32 4294901760, %v27_v28  ;;  %v423_v42 = vand.u32 4294901760, %v1287_v33  ;;  %v29_v9 = vld [vmem:[%s1476_s1 + $0x60] sm:$0x3] }
   0xd   :  { %108 = vmatpush.xpose.msra.mxu1 %v107_v25  ;;  %v81_v31 = vsub.f32 %v40_v22, %v80_v26  ;;  %v272_v35 = vand.u32 4294901760, %v271_v27  ;;  %v1292_v36 = vsub.f32 %v41_v24, %v1284_v30  ;;  %v1311_v46 = vand.u32 4294901760, %v20_v39  ;;  %v42_v52 = vld.sshfl [vmem:[#allocation1 + $0x10] sm:$0xff pattern:$0x73625140] }
   0xe   :  { %267 = vmatpush.xpose.msrb.mxu3 %v266_v29  ;;  %v1309_v45 = vsub.f32 %v27_v28, %v1294_v37  ;;  %v424_v50 = vsub.f32 %v1287_v33, %v423_v42  ;;  %v429_v51 = vand.u32 4294901760, %v1303_v43  ;;  %v43_v55 = vld.sshfl [vmem:[#allocation1 + $0x18] sm:$0xff pattern:$0x73625140]  ;;  %v1333_v58 = vand.u32 4294901760, %v42_v52 }
   0xf   :  { %236 = vmatpush.xpose.msrb.mxu2 %v1256_v6  ;;  %v82_v38 = vand.u32 4294901760, %v81_v31  ;;  %v241_v40 = vand.u32 4294901760, %v1292_v36  ;;  %v1324_v54 = vsub.f32 %v20_v39, %v1311_v46  ;;  %v1340_v61 = vand.u32 4294901760, %v43_v55 }
  0x10   :  { %192 = vmatpush.xpose.msrb.mxu0 %v111_v14  ;;  %142 = vmatmul.f32.vlgmr.msra.gmra.mxu2 %v81_v31  ;;  %v582_v53 = vand.u32 4294901760, %v1309_v45  ;;  %v425_v56 = vand.u32 4294901760, %v424_v50  ;;  %v430_v57 = vsub.f32 %v1303_v43, %v429_v51  ;;  %v399_v63 = vsub.f32 %v42_v52, %v1333_v58 }
  0x11   :  { %114 = vmatpush.xpose.msra.mxu1 %v113_v32  ;;  %v83_v41 = vsub.f32 %v81_v31, %v82_v38  ;;  %167 = vmatmul.f32.vlgmr.msra.gmra.mxu3 %v82_v38  ;;  %v242_v44 = vsub.f32 %v1292_v36, %v241_v40  ;;  %v588_v60 = vand.u32 4294901760, %v1324_v54  ;;  %v1356_v5 = vand.u32 4294901760, %v28_v2 }
  0x12   :  { %273 = vmatpush.xpose.msrb.mxu3 %v272_v35  ;;  %v583_v59 = vsub.f32 %v1309_v45, %v582_v53  ;;  %v431_v62 = vand.u32 4294901760, %v430_v57  ;;  %v1374_v12 = vand.u32 4294901760, %v21_v7  ;;  %v1378_v13 = vand.u32 4294901760, %v29_v9  ;;  %v44_v24 = vld.sshfl [vmem:[#allocation1 + $0x20] sm:$0xff pattern:$0x73625140] }
  0x13   :  { %238 = vmatpush.xpose.msrb.mxu2 %v1262_v10  ;;  %v84_v48 = vand.u32 4294901760, %v83_v41  ;;  %v243_v49 = vand.u32 4294901760, %v242_v44  ;;  %v589_v1 = vsub.f32 %v1324_v54, %v588_v60  ;;  %v45_v27 = vld.sshfl [vmem:[#allocation1 + $0x28] sm:$0xff pattern:$0x73625140]  ;;  %vm53_vm0 = vcmask 130048  }
  0x14   :  { %116 = vmatmul.f32.vlgmr.msra.gmra.mxu1 %v80_v26  ;;  %v584_v0 = vand.u32 4294901760, %v583_v59  ;;  %v1389_v18 = vsub.f32 %v21_v7, %v1374_v12  ;;  %v23_v41 = vld [vmem:[%s1476_s1 + $0x30] sm:$0xff]  ;;  %vm1175_vm1 = vcmask 74752  }
  0x15   :  { %213 = vmatpush.xpose.msrb.mxu1 %v76_v3  ;;  %85 = vmatmul.f32.vlgmr.msra.gmra.mxu0 %v84_v48  ;;  %v1352_v3 = vsub.f32 %v43_v55, %v1340_v61  ;;  %v46_v55 = vld.sshfl [vmem:[#allocation1 + $0x30] sm:$0xff pattern:$0x73625140] }
  0x16   :  { %372 = vmatpush.xpose.msra.mxu3 %v1256_v6  ;;  %295 = vmatpush.xpose.msra.mxu0 %v263_v11  ;;  %v1372_v11 = vsub.f32 %v28_v2, %v1356_v5  ;;  %v747_v23 = vand.u32 4294901760, %v1389_v18 }
  0x17   :  { %347 = vmatpush.xpose.msra.mxu2 %v264_v16  ;;  %v559_v8 = vand.u32 4294901760, %v1352_v3 }
  0x18   :  { %244 = vmatmul.f32.vlgmr.msrb.gmra.mxu2 %v243_v49  ;;  %v741_v17 = vand.u32 4294901760, %v1372_v11  ;;  %v748_v29 = vsub.f32 %v1389_v18, %v747_v23 }
  0x19   :  { %215 = vmatpush.xpose.msrb.mxu1 %v1251_v4  ;;  %275 = vmatmul.f32.vlgmr.msrb.gmra.mxu3 %v1284_v30  ;;  %v400_v4 = vand.u32 4294901760, %v399_v63  ;;  %v560_v14 = vsub.f32 %v1352_v3, %v559_v8 }
  0x1a   :  { %374 = vmatpush.xpose.msra.mxu3 %v1262_v10  ;;  %298 = vmatpush.xpose.msra.mxu0 %v1269_v15  ;;  %v22_v15 = vld [vmem:[%s1476_s1 + $0x28] sm:$0xff]  ;;  %v742_v22 = vsub.f32 %v1372_v11, %v741_v17  ;;  %v749_v35 = vand.u32 4294901760, %v748_v29 }
  0x1b   :  { %351 = vmatpush.xpose.msra.mxu2 %v270_v19  ;;  %v1395_v19 = vsub.f32 %v29_v9, %v1378_v13  ;;  %v561_v21 = vand.u32 4294901760, %v560_v14 }
  0x1c   :  { %217 = vmatmul.f32.vlgmr.msrb.gmra.mxu1 %v80_v26  ;;  %v743_v28 = vand.u32 4294901760, %v742_v22 }
  0x1d   :  { %320 = vmatpush.xpose.msra.mxu1 %v1256_v6  ;;  %194 = vmatmul.f32.vlgmr.msrb.gmra.mxu0 %v80_v26  ;;  %v590_v6 = vand.u32 4294901760, %v589_v1  ;;  %v900_v25 = vand.u32 4294901760, %v1395_v19 }
  0x1e   :  { %479 = vmatpush.xpose.msrb.mxu3 %v1274_v20  ;;  %395 = vmatpush.xpose.msrb.mxu0 %v1274_v20 }
  0x1f   :  { %454 = vmatpush.xpose.msrb.mxu2 %v1287_v33  ;;  %v901_v31 = vsub.f32 %v1395_v19, %v900_v25  ;;  %v1421_v33 = vand.u32 4294901760, %v45_v27 }
  0x20   :  { %353 = vmatmul.f32.vlgmr.msra.gmra.mxu2 %v1284_v30 }
  0x21   :  { %322 = vmatpush.xpose.msra.mxu1 %v1262_v10  ;;  %376 = vmatmul.f32.vlgmr.msra.gmra.mxu3 %v1284_v30  ;;  %v401_v10 = vsub.f32 %v399_v63, %v400_v4  ;;  %v1415_v30 = vand.u32 4294901760, %v44_v24 }
  0x22   :  { %481 = vmatpush.xpose.msrb.mxu3 %v1289_v34  ;;  %397 = vmatpush.xpose.msrb.mxu0 %v1289_v34 }
  0x23   :  { %457 = vmatpush.xpose.msrb.mxu2 %v1303_v43  ;;  %v402_v16 = vand.u32 4294901760, %v401_v10 }
  0x24   :  { %326 = vmatmul.f32.vlgmr.msra.gmra.mxu1 %v241_v40  ;;  %v1436_v40 = vsub.f32 %v45_v27, %v1421_v33 }
  0x25   :  { %426 = vmatpush.xpose.msrb.mxu1 %v425_v56  ;;  %301 = vmatmul.f32.vlgmr.msra.gmra.mxu0 %v1292_v36  ;;  %v717_v36 = vsub.f32 %v44_v24, %v1415_v30 }
  0x26   :  { %585 = vmatpush.xpose.msra.mxu3 %v584_v0  ;;  %506 = vmatpush.xpose.msra.mxu0 %v423_v42 }
  0x27   :  { %554 = vmatpush.xpose.msra.mxu2 %v1294_v37  ;;  %v718_v42 = vand.u32 4294901760, %v717_v36 }
  0x28   :  { %460 = vmatmul.f32.vlgmr.msrb.gmra.mxu2 %v399_v63 }
  0x29   :  { %432 = vmatpush.xpose.msrb.mxu1 %v431_v62  ;;  %485 = vmatmul.f32.vlgmr.msrb.gmra.mxu3 %v400_v4  ;;  %v719_v47 = vsub.f32 %v717_v36, %v718_v42 }
  0x2a   :  { %591 = vmatpush.xpose.msra.mxu3 %v590_v6  ;;  %510 = vmatpush.xpose.msra.mxu0 %v429_v51 }
  0x2b   :  { %556 = vmatpush.xpose.msra.mxu2 %v1311_v46  ;;  %v720_v51 = vand.u32 4294901760, %v719_v47 }
  0x2c   :  { %434 = vmatmul.f32.vlgmr.msrb.gmra.mxu1 %v1333_v58 }
  0x2d   :  { %531 = vmatpush.xpose.msra.mxu1 %v1274_v20  ;;  %v1397_v20 = vand.u32 4294901760, %v22_v15  ;;  %403 = vmatmul.f32.vlgmr.msrb.gmra.mxu0 %v402_v16 }
  0x2e   :  { %690 = vmatpush.xpose.msrb.mxu3 %v1294_v37  ;;  %613 = vmatpush.xpose.msrb.mxu0 %v1309_v45  ;;  %v57_v45 = vsel %vm53_vm0, %v23_v41, 0 }
  0x2f   :  { %665 = vmatpush.xpose.msrb.mxu2 %v582_v53  ;;  %v1409_v26 = vsub.f32 %v22_v15, %v1397_v20  ;;  %v1032_v49 = vand.u32 4294901760, %v57_v45 }
  0x30   :  { %562 = vmatmul.f32.vlgmr.msra.gmra.mxu2 %v561_v21 }
  0x31   :  { %533 = vmatpush.xpose.msra.mxu1 %v1289_v34  ;;  %593 = vmatmul.f32.vlgmr.msra.gmra.mxu3 %v1340_v61  ;;  %v906_v32 = vand.u32 4294901760, %v1409_v26  ;;  %v30_v34 = vld [vmem:[%s1476_s1 + $0x68] sm:$0x3]  ;;  %v1064_v53 = vsub.f32 %v57_v45, %v1032_v49 }
  0x32   :  { %692 = vmatpush.xpose.msrb.mxu3 %v1311_v46  ;;  %616 = vmatpush.xpose.msrb.mxu0 %v1324_v54  ;;  %v60_v39 = vsel %vm53_vm0, %v30_v34, 0 }
  0x33   :  { %669 = vmatpush.xpose.msrb.mxu2 %v588_v60  ;;  %v907_v38 = vsub.f32 %v1409_v26, %v906_v32  ;;  %v1030_v43 = vand.u32 4294901760, %v60_v39  ;;  %v1065_v57 = vand.u32 4294901760, %v1064_v53 }
  0x34   :  { %535 = vmatmul.f32.vlgmr.msra.gmra.mxu1 %v1333_v58 }
  0x35   :  { %638 = vmatpush.xpose.msrb.mxu1 %v1294_v37  ;;  %512 = vmatmul.f32.vlgmr.msra.gmra.mxu0 %v1333_v58  ;;  %v902_v37 = vand.u32 4294901760, %v901_v31  ;;  %v908_v44 = vand.u32 4294901760, %v907_v38  ;;  %v1058_v48 = vsub.f32 %v60_v39, %v1030_v43  ;;  %v54_v58 = vsel %vm53_vm0, %v46_v55, 0 }
  0x36   :  { %797 = vmatpush.xpose.msra.mxu3 %v1356_v5  ;;  %713 = vmatpush.xpose.msra.mxu0 %v1356_v5  ;;  %v1066_v60 = vsub.f32 %v1064_v53, %v1065_v57 }
  0x37   :  { %772 = vmatpush.xpose.msra.mxu2 %v1372_v11  ;;  %v1059_v52 = vand.u32 4294901760, %v1058_v48 }
  0x38   :  { %671 = vmatmul.f32.vlgmr.msrb.gmra.mxu2 %v1340_v61  ;;  %v1067_v62 = vand.u32 4294901760, %v1066_v60 }
  0x39   :  { %640 = vmatpush.xpose.msrb.mxu1 %v1311_v46  ;;  %694 = vmatmul.f32.vlgmr.msrb.gmra.mxu3 %v1340_v61  ;;  %v877_v46 = vand.u32 4294901760, %v1436_v40  ;;  %v1060_v56 = vsub.f32 %v1058_v48, %v1059_v52  ;;  %v1034_v61 = vand.u32 4294901760, %v54_v58 }
  0x3a   :  { %799 = vmatpush.xpose.msra.mxu3 %v1374_v12  ;;  %715 = vmatpush.xpose.msra.mxu0 %v1374_v12 }
  0x3b   :  { %775 = vmatpush.xpose.msra.mxu2 %v1389_v18  ;;  %v878_v50 = vsub.f32 %v1436_v40, %v877_v46  ;;  %v1061_v59 = vand.u32 4294901760, %v1060_v56  ;;  %v1035_v63 = vsub.f32 %v54_v58, %v1034_v61 }
  0x3c   :  { %644 = vmatmul.f32.vlgmr.msrb.gmra.mxu1 %v559_v8 }
  0x3d   :  { %744 = vmatpush.xpose.msra.mxu1 %v743_v28  ;;  %619 = vmatmul.f32.vlgmr.msrb.gmra.mxu0 %v1352_v3  ;;  %v879_v54 = vand.u32 4294901760, %v878_v50  ;;  %v1036_v0 = vand.u32 4294901760, %v1035_v63  ;;  %v1194_v3 = vld [vmem:[%s1477_s2] ss:$0 sm:$0xff]  ;;  %s1221_s2 = smov [#allocation2]  }
  0x3e   :  { %903 = vmatpush.xpose.msrb.mxu3 %v902_v37  ;;  %824 = vmatpush.xpose.msrb.mxu0 %v741_v17  ;;  %s1182_s17 = sshll.u32 %s1221_s2, 4  ;;  %s1183_s17 = int_to_ptr.vmem [resolvable:$true] %s1182_s17 }
  0x3f   :  { %872 = vmatpush.xpose.msrb.mxu2 %v1378_v13  ;;  %v1037_v1 = vsub.f32 %v1035_v63, %v1036_v0 }
  0x40   :  { %778 = vmatmul.f32.vlgmr.msra.gmra.mxu2 %v717_v36 }
  0x41   :  { %750 = vmatpush.xpose.msra.mxu1 %v749_v35  ;;  %803 = vmatmul.f32.vlgmr.msra.gmra.mxu3 %v718_v42  ;;  %v1038_v2 = vand.u32 4294901760, %v1037_v1 }
  0x42   :  { %909 = vmatpush.xpose.msrb.mxu3 %v908_v44  ;;  %828 = vmatpush.xpose.msrb.mxu0 %v747_v23 }
  0x43   :  { %874 = vmatpush.xpose.msrb.mxu2 %v1397_v20 }
  0x44   :  { %752 = vmatmul.f32.vlgmr.msra.gmra.mxu1 %v1415_v30 }
  0x45   :  { %849 = vmatpush.xpose.msrb.mxu1 %v1356_v5  ;;  %721 = vmatmul.f32.vlgmr.msra.gmra.mxu0 %v720_v51 }
  0x46   :  { %1008 = vmatpush.xpose.msra.mxu3 %v1378_v13  ;;  %931 = vmatpush.xpose.msra.mxu0 %v1395_v19 }
  0x47   :  { %983 = vmatpush.xpose.msra.mxu2 %v900_v25 }
  0x48   :  { %880 = vmatmul.f32.vlgmr.msrb.gmra.mxu2 %v879_v54 }
  0x49   :  { %851 = vmatpush.xpose.msrb.mxu1 %v1374_v12  ;;  %911 = vmatmul.f32.vlgmr.msrb.gmra.mxu3 %v1421_v33 }
  0x4a   :  { %1010 = vmatpush.xpose.msra.mxu3 %v1397_v20  ;;  %934 = vmatpush.xpose.msra.mxu0 %v1409_v26 }
  0x4b   :  { %987 = vmatpush.xpose.msra.mxu2 %v906_v32 }
  0x4c   :  { %853 = vmatmul.f32.vlgmr.msrb.gmra.mxu1 %v1415_v30 }
  0x4d   :  { %956 = vmatpush.xpose.msra.mxu1 %v1378_v13  ;;  %830 = vmatmul.f32.vlgmr.msrb.gmra.mxu0 %v1415_v30 }
  0x4e   :  { %1115 = vmatpush.xpose.msrb.mxu3 %v1030_v43  ;;  %1031 = vmatpush.xpose.msrb.mxu0 %v1030_v43 }
  0x4f   :  { %1090 = vmatpush.xpose.msrb.mxu2 %v1058_v48 }
  0x50   :  { %989 = vmatmul.f32.vlgmr.msra.gmra.mxu2 %v1421_v33 }
  0x51   :  { %958 = vmatpush.xpose.msra.mxu1 %v1397_v20  ;;  %1012 = vmatmul.f32.vlgmr.msra.gmra.mxu3 %v1421_v33 }
  0x52   :  { %1117 = vmatpush.xpose.msrb.mxu3 %v1032_v49  ;;  %1033 = vmatpush.xpose.msrb.mxu0 %v1032_v49 }
  0x53   :  { %1093 = vmatpush.xpose.msrb.mxu2 %v1064_v53 }
  0x54   :  { %962 = vmatmul.f32.vlgmr.msra.gmra.mxu1 %v877_v46 }
  0x55   :  { %1062 = vmatpush.xpose.msrb.mxu1 %v1061_v59  ;;  %937 = vmatmul.f32.vlgmr.msra.gmra.mxu0 %v1436_v40 }
  0x56   :  { %1142 = vmatpush.xpose.msra.mxu0 %v1059_v52 }
  0x58   :  { %1096 = vmatmul.f32.vlgmr.msrb.gmra.mxu2 %v1035_v63 }
  0x59   :  { %1068 = vmatpush.xpose.msrb.mxu1 %v1067_v62  ;;  %1121 = vmatmul.f32.vlgmr.msrb.gmra.mxu3 %v1036_v0 }
  0x5a   :  { %1146 = vmatpush.xpose.msra.mxu0 %v1065_v57 }
  0x5c   :  { %1070 = vmatmul.f32.vlgmr.msrb.gmra.mxu1 %v1034_v61 }
  0x5d   :  { %1167 = vmatpush.xpose.msra.mxu1 %v1030_v43  ;;  %1039 = vmatmul.f32.vlgmr.msrb.gmra.mxu0 %v1038_v2 }
  0x61   :  { %1169 = vmatpush.xpose.msra.mxu1 %v1032_v49 }
  0x64   :  { %1171 = vmatmul.f32.vlgmr.msra.gmra.mxu1 %v1034_v61 }
  0x65   :  { %1148 = vmatmul.f32.vlgmr.msra.gmra.mxu0 %v1034_v61 }
  0x91   :  { %v117_v4 = vpop.f32.mrf.mxu1 }
  0x92   :  { %v86_v5 = vpop.f32.mrf.mxu0 }
  0x93   :  { %v143_v6 = vpop.f32.mrf.mxu2  ;;  %v87_v7 = vadd.f32 %v1194_v3, %v86_v5 }
  0x94   :  { %v168_v8 = vpop.f32.mrf.mxu3 }
  0x95   :  { %v118_v9 = vadd.f32 %v117_v4, %v87_v7 }
  0x97   :  { %v144_v10 = vadd.f32 %v143_v6, %v118_v9 }
  0x99   :  { %v169_v11 = vadd.f32 %v168_v8, %v144_v10  ;;  %v218_v12 = vpop.f32.mrf.mxu1 }
  0x9a   :  { %v195_v13 = vpop.f32.mrf.mxu0 }
  0x9b   :  { %v245_v14 = vpop.f32.mrf.mxu2  ;;  %v196_v15 = vadd.f32 %v195_v13, %v169_v11 }
  0x9c   :  { %v276_v16 = vpop.f32.mrf.mxu3 }
  0x9d   :  { %v219_v17 = vadd.f32 %v218_v12, %v196_v15 }
  0x9f   :  { %v246_v18 = vadd.f32 %v245_v14, %v219_v17 }
  0xa1   :  { %v277_v19 = vadd.f32 %v276_v16, %v246_v18  ;;  %v327_v20 = vpop.f32.mrf.mxu1 }
  0xa2   :  { %v302_v21 = vpop.f32.mrf.mxu0 }
  0xa3   :  { %v354_v22 = vpop.f32.mrf.mxu2  ;;  %v303_v23 = vadd.f32 %v302_v21, %v277_v19 }
  0xa4   :  { %v377_v24 = vpop.f32.mrf.mxu3 }
  0xa5   :  { %v328_v25 = vadd.f32 %v327_v20, %v303_v23 }
  0xa7   :  { %v355_v26 = vadd.f32 %v354_v22, %v328_v25 }
  0xa9   :  { %v378_v27 = vadd.f32 %v377_v24, %v355_v26  ;;  %v435_v28 = vpop.f32.mrf.mxu1 }
  0xaa   :  { %v404_v29 = vpop.f32.mrf.mxu0 }
  0xab   :  { %v461_v30 = vpop.f32.mrf.mxu2  ;;  %v405_v31 = vadd.f32 %v404_v29, %v378_v27 }
  0xac   :  { %v486_v32 = vpop.f32.mrf.mxu3 }
  0xad   :  { %v436_v33 = vadd.f32 %v435_v28, %v405_v31 }
  0xaf   :  { %v462_v34 = vadd.f32 %v461_v30, %v436_v33 }
  0xb1   :  { %v487_v35 = vadd.f32 %v486_v32, %v462_v34  ;;  %v536_v36 = vpop.f32.mrf.mxu1 }
  0xb2   :  { %v513_v37 = vpop.f32.mrf.mxu0 }
  0xb3   :  { %v563_v38 = vpop.f32.mrf.mxu2  ;;  %v514_v39 = vadd.f32 %v513_v37, %v487_v35 }
  0xb4   :  { %v594_v40 = vpop.f32.mrf.mxu3 }
  0xb5   :  { %v537_v41 = vadd.f32 %v536_v36, %v514_v39 }
  0xb7   :  { %v564_v42 = vadd.f32 %v563_v38, %v537_v41 }
  0xb9   :  { %v595_v43 = vadd.f32 %v594_v40, %v564_v42  ;;  %v645_v44 = vpop.f32.mrf.mxu1 }
  0xba   :  { %v620_v45 = vpop.f32.mrf.mxu0 }
  0xbb   :  { %v672_v46 = vpop.f32.mrf.mxu2  ;;  %v621_v47 = vadd.f32 %v620_v45, %v595_v43 }
  0xbc   :  { %v695_v48 = vpop.f32.mrf.mxu3 }
  0xbd   :  { %v646_v49 = vadd.f32 %v645_v44, %v621_v47 }
  0xbf   :  { %v673_v50 = vadd.f32 %v672_v46, %v646_v49 }
  0xc1   :  { %v696_v51 = vadd.f32 %v695_v48, %v673_v50  ;;  %v753_v52 = vpop.f32.mrf.mxu1 }
  0xc2   :  { %v722_v53 = vpop.f32.mrf.mxu0 }
  0xc3   :  { %v779_v54 = vpop.f32.mrf.mxu2  ;;  %v723_v55 = vadd.f32 %v722_v53, %v696_v51 }
  0xc4   :  { %v804_v56 = vpop.f32.mrf.mxu3 }
  0xc5   :  { %v754_v57 = vadd.f32 %v753_v52, %v723_v55 }
  0xc7   :  { %v780_v58 = vadd.f32 %v779_v54, %v754_v57 }
  0xc9   :  { %v805_v59 = vadd.f32 %v804_v56, %v780_v58  ;;  %v854_v60 = vpop.f32.mrf.mxu1 }
  0xca   :  { %v831_v61 = vpop.f32.mrf.mxu0 }
  0xcb   :  { %v881_v62 = vpop.f32.mrf.mxu2  ;;  %v832_v63 = vadd.f32 %v831_v61, %v805_v59 }
  0xcc   :  { %v912_v0 = vpop.f32.mrf.mxu3 }
  0xcd   :  { %v855_v1 = vadd.f32 %v854_v60, %v832_v63 }
  0xcf   :  { %v882_v2 = vadd.f32 %v881_v62, %v855_v1 }
  0xd1   :  { %v913_v3 = vadd.f32 %v912_v0, %v882_v2  ;;  %v963_v4 = vpop.f32.mrf.mxu1 }
  0xd2   :  { %v938_v5 = vpop.f32.mrf.mxu0 }
  0xd3   :  { %v990_v6 = vpop.f32.mrf.mxu2  ;;  %v939_v7 = vadd.f32 %v938_v5, %v913_v3 }
  0xd4   :  { %v1013_v8 = vpop.f32.mrf.mxu3 }
  0xd5   :  { %v964_v9 = vadd.f32 %v963_v4, %v939_v7 }
  0xd7   :  { %v991_v10 = vadd.f32 %v990_v6, %v964_v9 }
  0xd9   :  { %v1014_v11 = vadd.f32 %v1013_v8, %v991_v10  ;;  %v1071_v12 = vpop.f32.mrf.mxu1 }
  0xda   :  { %v1040_v13 = vpop.f32.mrf.mxu0 }
  0xdb   :  { %v1041_v14 = vadd.f32 %v1040_v13, %v1014_v11  ;;  %v1097_v15 = vpop.f32.mrf.mxu2 }
  0xdc   :  { %v1122_v17 = vpop.f32.mrf.mxu3 }
  0xdd   :  { %v1072_v16 = vadd.f32 %v1071_v12, %v1041_v14 }
  0xdf   :  { %v1098_v18 = vadd.f32 %v1097_v15, %v1072_v16 }
  0xe1   :  { %v1123_v19 = vadd.f32 %v1122_v17, %v1098_v18  ;;  %v1172_v21 = vpop.f32.mrf.mxu1 }
  0xe2   :  { %v1149_v20 = vpop.f32.mrf.mxu0 }
  0xe3   :  { %v1150_v22 = vadd.f32 %v1149_v20, %v1123_v19 }
  0xe5   :  { %v1173_v23 = vadd.f32 %v1172_v21, %v1150_v22 }
  0xe7   :  { %1176 = vst.msk [vmem:[#allocation2] sm:$0x3] %vm1175_vm1, %v1173_v23 }
  0xe8   :  { %1187 = dma.vmem_to_hbm [thread:$0]  %s1183_s17, 32, %s1185_s20, [#allocation3]  }
  0xe9   :  { %1219 = dma.done.wait [#allocation3], 32  }
  0xea   :  { %1220 = vsyncadd [#allocation3], 4294967264 }
  0xeb   :  { %1192 = vsyncpa [#allocation3], 1 }

</bundles_post_ra>
